<compile_context>
chip_gen: v6e
topology: v6e:2x2x1
jax: 0.10.0
libtpu: 0.0.40
codegen_flags: <defaults>
</compile_context>

<pallas_src>
import functools

import jax
import jax.numpy as jnp
from jax.experimental import pallas as pl
from jax.experimental.pallas import tpu as pltpu


def _num_tensorcores():
    """Best-effort TensorCore count per device; defaults to 1 if unknown."""
    try:
        info = pltpu.get_tpu_info()
    except Exception:
        return 1
    for name in ("num_cores", "core_count", "num_tensorcores",
                 "tensorcore_count", "cores_per_chip", "num_cores_per_chip"):
        n = getattr(info, name, None)
        if isinstance(n, int) and 1 <= n <= 8:
            return n
    return 1


def _hl_loss_kernel(x_ref, y_ref, o_ref, acc_ref, *,
                    tiles_per_split, n_tiles, last_valid_rows,
                    acc_rows, n_chunks, cols, has_dup):
    i = pl.program_id(0)
    k = pl.program_id(1)

    @pl.when(k == 0)
    def _():
        acc_ref[...] = jnp.zeros_like(acc_ref)

    block_rows = acc_rows * n_chunks
    ragged = last_valid_rows != block_rows          # static python bool

    def accumulate(masked):
        # Static inner loop over row-chunks keeps per-value vreg/VMEM
        # temporaries small even though the DMA block is large.
        for c in range(n_chunks):
            r0 = c * acc_rows
            if masked and r0 >= last_valid_rows:
                break                               # fully-invalid chunk: skip
            xs = x_ref[pl.ds(r0, acc_rows), :]
            ys = y_ref[pl.ds(r0, acc_rows), :]
            d = xs - ys
            # Fused: d^2/x + d^2/(1-x) == d^2 / (x*(1-x)).
            v = (d * d) / (xs * (1.0 - xs))
            if masked and (r0 + acc_rows > last_valid_rows):
                rid = jax.lax.broadcasted_iota(jnp.int32, (acc_rows, cols), 0)
                # Select (NOT multiply): garbage rows may hold Inf/NaN.
                v = jnp.where(rid < (last_valid_rows - r0), v, 0.0)
            acc_ref[...] += v

    if not (ragged or has_dup):
        # Common case: every tile is full — cheap unmasked path only.
        accumulate(False)
    else:
        global_tile = i * tiles_per_split + k

        @pl.when(global_tile < n_tiles - 1)
        def _():
            accumulate(False)

        @pl.when(global_tile == n_tiles - 1)
        def _():
            accumulate(ragged)
        # global_tile >= n_tiles (clamped duplicate tile on the core split)
        # contributes nothing.

    @pl.when(k == pl.num_programs(1) - 1)
    def _():
        o_ref[0, 0] = jnp.sum(acc_ref[...])


def hl_loss(x, y):
    """mean((x-y)^2/x + (x-y)^2/(1-x)) computed with a Pallas TPU kernel."""
    assert x.shape == y.shape
    xf = jnp.asarray(x, jnp.float32).reshape(-1)
    yf = jnp.asarray(y, jnp.float32).reshape(-1)
    total_n = xf.size

    # Lane-dense column count; the reshape is copy-free when it divides.
    cols = None
    for c in (512, 256, 128):
        if total_n % c == 0:
            cols = c
            break
    tail_sum = jnp.float32(0.0)
    if cols is None:
        # Rare ragged tail (< 128 elems): plain jnp outside the kernel,
        # no full-array concatenate/pad.
        cols = 128
        main_n = (total_n // cols) * cols
        xt, yt = xf[main_n:], yf[main_n:]
        dt = xt - yt
        tail_sum = jnp.sum((dt * dt) / (xt * (1.0 - xt)))
        if main_n == 0:
            return tail_sum / jnp.float32(total_n)
        # TODO(synk): this prefix slice still copies the main body once for
        # sizes not divisible by 128; acceptable for the rare edge case.
        xf, yf = xf[:main_n], yf[:main_n]
    rows = xf.size // cols
    x2d = xf.reshape(rows, cols)
    y2d = yf.reshape(rows, cols)

    # Compute chunk ~32K f32 elems; DMA block ~1M f32 elems (4 MiB / input).
    chunk_rows = max(8, (1 << 15) // cols)
    target_rows = max(chunk_rows, (1 << 20) // cols)
    if rows <= chunk_rows:
        acc_rows, n_chunks = rows, 1
    else:
        block_rows_rounded = -(-rows // chunk_rows) * chunk_rows
        acc_rows = chunk_rows
        n_chunks = min(target_rows, block_rows_rounded) // chunk_rows
    block_rows = acc_rows * n_chunks
    n_tiles = -(-rows // block_rows)
    last_valid_rows = rows - (n_tiles - 1) * block_rows

    block_bytes = block_rows * cols * 4
    # 2 inputs x 2 pipeline buffers + small acc + headroom for temporaries.
    vmem_limit = int(min(48 << 20, max(32 << 20, 4 * block_bytes + (8 << 20))))

    def run(num_splits):
        tiles_per_split = -(-n_tiles // num_splits)
        has_dup = num_splits * tiles_per_split > n_tiles

        if has_dup:
            def in_idx(i, k):
                return (jnp.minimum(i * tiles_per_split + k, n_tiles - 1), 0)
        else:
            def in_idx(i, k):
                return (i * tiles_per_split + k, 0)

        if num_splits > 1:
            dims = (pltpu.CORE_PARALLEL, pltpu.ARBITRARY)  # 2-TC split (v7x)
        else:
            dims = ("arbitrary", "arbitrary")

        kernel = functools.partial(
            _hl_loss_kernel,
            tiles_per_split=tiles_per_split, n_tiles=n_tiles,
            last_valid_rows=last_valid_rows, acc_rows=acc_rows,
            n_chunks=n_chunks, cols=cols, has_dup=has_dup)

        return pl.pallas_call(
            kernel,
            out_shape=jax.ShapeDtypeStruct((num_splits, 1), jnp.float32),
            grid_spec=pltpu.PrefetchScalarGridSpec(
                num_scalar_prefetch=0,
                grid=(num_splits, tiles_per_split),
                in_specs=[
                    pl.BlockSpec((block_rows, cols), in_idx),
                    pl.BlockSpec((block_rows, cols), in_idx),
                ],
                out_specs=pl.BlockSpec((1, 1), lambda i, k: (i, 0),
                                       memory_space=pltpu.SMEM),
                scratch_shapes=[pltpu.VMEM((acc_rows, cols), jnp.float32)],
            ),
            compiler_params=pltpu.CompilerParams(
                dimension_semantics=dims,
                vmem_limit_bytes=vmem_limit),
        )(x2d, y2d)

    cores = _num_tensorcores()
    num_splits = cores if (cores > 1 and n_tiles >= cores) else 1
    if num_splits > 1:
        try:
            partials = run(num_splits)
        except Exception:
            # Conservative fallback if CORE_PARALLEL is unsupported here.
            partials = run(1)
    else:
        partials = run(1)

    return (jnp.sum(partials) + tail_sum) / jnp.float32(total_n)


def hl_loss_ref(x, y):
    d2 = (x - y) ** 2
    return jnp.mean(d2 / x + d2 / (1.0 - x))


if __name__ == "__main__":
    key = jax.random.PRNGKey(0)
    kx, ky = jax.random.split(key)
    # x must avoid 0 and 1 (division by x and 1-x), like probabilities.
    shape = (2, 4, 16, 16)
    x = jax.random.uniform(kx, shape, jnp.float32, minval=0.1, maxval=0.9)
    y = jax.random.uniform(ky, shape, jnp.float32, minval=0.0, maxval=1.0)

    out = hl_loss(x, y)
    out = jax.block_until_ready(out)

    ref = hl_loss_ref(x, y)
    assert jnp.allclose(out, ref, rtol=1e-5, atol=1e-5), (out, ref)
    print("KERNEL_OK")
</pallas_src>

<mosaic_0001>
module attributes {stable_mosaic.version = 11 : i64} {
  func.func @_hl_loss_kernel(%arg0: i32, %arg1: i32, %arg2: memref<4x512xf32, #tpu.memory_space<vmem>>, %arg3: memref<4x512xf32, #tpu.memory_space<vmem>>, %arg4: memref<1x1xf32, #tpu.memory_space<smem>>, %arg5: memref<4x512xf32, #tpu.memory_space<vmem>>) attributes {dimension_semantics = [#tpu.dimension_semantics<arbitrary>, #tpu.dimension_semantics<arbitrary>], iteration_bounds = array<i64: 1, 1>, scalar_prefetch = 0 : i64, scratch_operands = 1 : i64, tpu.core_type = #tpu.core_type<tc>, window_params = [{transform_indices = @transform_0, window_bounds = array<i64: 4, 512>}, {transform_indices = @transform_1, window_bounds = array<i64: 4, 512>}, {transform_indices = @transform_2, window_bounds = array<i64: 1, 1>}]} {
    %c0_i32 = arith.constant 0 : i32
    %0 = arith.cmpi eq, %arg1, %c0_i32 : i32
    %1 = arith.extui %0 : i1 to i32
    %c0_i32_0 = arith.constant 0 : i32
    %2 = arith.cmpi ne, %1, %c0_i32_0 : i32
    scf.if %2 {
      %cst_10 = arith.constant 0.000000e+00 : f32
      %17 = vector.broadcast %cst_10 : f32 to vector<4x512xf32>
      %c0_11 = arith.constant 0 : index
      %c0_12 = arith.constant 0 : index
      %18 = vector.load %arg5[%c0_11, %c0_12] : memref<4x512xf32, #tpu.memory_space<vmem>>, vector<4x512xf32>
      tpu.vector_store %arg5[%c0_11, %c0_12], %17 {strides = array<i32>} : memref<4x512xf32, #tpu.memory_space<vmem>>, vector<4x512xf32>,
    } else {
    }
    %c0 = arith.constant 0 : index
    %c0_1 = arith.constant 0 : index
    %3 = vector.load %arg2[%c0, %c0_1] : memref<4x512xf32, #tpu.memory_space<vmem>>, vector<4x512xf32>
    %c0_2 = arith.constant 0 : index
    %c0_3 = arith.constant 0 : index
    %4 = vector.load %arg3[%c0_2, %c0_3] : memref<4x512xf32, #tpu.memory_space<vmem>>, vector<4x512xf32>
    %5 = arith.subf %3, %4 : vector<4x512xf32>
    %6 = arith.mulf %5, %5 : vector<4x512xf32>
    %cst = arith.constant 1.000000e+00 : f32
    %7 = vector.broadcast %cst : f32 to vector<4x512xf32>
    %8 = arith.subf %7, %3 : vector<4x512xf32>
    %9 = arith.mulf %3, %8 : vector<4x512xf32>
    %10 = arith.divf %6, %9 : vector<4x512xf32>
    %c0_4 = arith.constant 0 : index
    %c0_5 = arith.constant 0 : index
    %11 = vector.load %arg5[%c0_4, %c0_5] : memref<4x512xf32, #tpu.memory_space<vmem>>, vector<4x512xf32>
    %12 = arith.addf %11, %10 : vector<4x512xf32>
    %c0_6 = arith.constant 0 : index
    %c0_7 = arith.constant 0 : index
    %13 = vector.load %arg5[%c0_6, %c0_7] : memref<4x512xf32, #tpu.memory_space<vmem>>, vector<4x512xf32>
    tpu.vector_store %arg5[%c0_6, %c0_7], %12 {strides = array<i32>} : memref<4x512xf32, #tpu.memory_space<vmem>>, vector<4x512xf32>,
    %c0_i32_8 = arith.constant 0 : i32
    %14 = arith.cmpi eq, %arg1, %c0_i32_8 : i32
    %15 = arith.extui %14 : i1 to i32
    %c0_i32_9 = arith.constant 0 : i32
    %16 = arith.cmpi ne, %15, %c0_i32_9 : i32
    scf.if %16 {
      %c0_10 = arith.constant 0 : index
      %c0_11 = arith.constant 0 : index
      %17 = vector.load %arg5[%c0_10, %c0_11] : memref<4x512xf32, #tpu.memory_space<vmem>>, vector<4x512xf32>
      %18 = vector.shape_cast %17 : vector<4x512xf32> to vector<1x4x512xf32>
      %cst_12 = arith.constant dense<0.000000e+00> : vector<1xf32>
      %19 = vector.multi_reduction <add>, %18, %cst_12 [1, 2] : vector<1x4x512xf32> to vector<1xf32>
      %20 = vector.shape_cast %19 : vector<1xf32> to vector<1x1x1xf32>
      %21 = vector.extract %20[0, 0, 0] : f32 from vector<1x1x1xf32>
      %c0_13 = arith.constant 0 : index
      %c0_14 = arith.constant 0 : index
      %22 = memref.load %arg4[%c0_13, %c0_14] : memref<1x1xf32, #tpu.memory_space<smem>>
      memref.store %21, %arg4[%c0_13, %c0_14] : memref<1x1xf32, #tpu.memory_space<smem>>
    } else {
    }
    return
  }
  func.func @transform_0(%arg0: i32, %arg1: i32) -> (i32, i32) {
    %c1_i32 = arith.constant 1 : i32
    %0 = arith.muli %arg0, %c1_i32 : i32
    %1 = arith.addi %0, %arg1 : i32
    %c0_i32 = arith.constant 0 : i32
    %c0_i32_0 = arith.constant 0 : i32
    return %1, %c0_i32 : i32, i32
  }
  func.func @transform_1(%arg0: i32, %arg1: i32) -> (i32, i32) {
    %c1_i32 = arith.constant 1 : i32
    %0 = arith.muli %arg0, %c1_i32 : i32
    %1 = arith.addi %0, %arg1 : i32
    %c0_i32 = arith.constant 0 : i32
    %c0_i32_0 = arith.constant 0 : i32
    return %1, %c0_i32 : i32, i32
  }
  func.func @transform_2(%arg0: i32, %arg1: i32) -> (i32, i32) {
    %c0_i32 = arith.constant 0 : i32
    %c0_i32_0 = arith.constant 0 : i32
    return %arg0, %c0_i32 : i32, i32
  }
}

</mosaic_0001>

<bundles_post_ra>
// kernel: tpu_custom_call.1
= control target key start
LH: loop header
LB: loop body
LE: loop exit
PB: predicated region body
PF: predicated region fallthrough
CT: control target
= control target key end

     0   :  { %7 = vsyncpa [#allocation4], 0  ;;  %s209_s0 = inlined_call_operand.hbm [shape: f32[4,512], index: 0, kind: input, shape index: {}]   ;;  %s210_s1 = inlined_call_operand.hbm [shape: f32[4,512], index: 1, kind: input, shape index: {}]   ;;  %s211_s2 = inlined_call_operand.hbm [shape: f32[1,1], index: 2, kind: output, shape index: {}]  }
   0x1   :  { %8 = vsyncpa [#allocation7], 0 }
   0x2   :  { %9 = vsyncpa [#allocation5], 0  ;;  %s182_s9 = smov [#allocation3]   ;;  %s183_s11 = smov [#allocation6]  }
   0x3   :  { %s20_s10 = sshll.u32 %s182_s9, 4  ;;  %s34_s12 = sshll.u32 %s183_s11, 4  ;;  %s21_s10 = int_to_ptr.vmem [resolvable:$true] %s20_s10  ;;  %s35_s12 = int_to_ptr.vmem [resolvable:$true] %s34_s12 }
   0x4   :  { %s136_s13 = scalar_lea.vmem %s21_s10, 256  ;;  %p141_p1 = scmp.lt.s32.totalorder %s21_s10, %s21_s10 }
   0x5   :  { %p137_p0 = scmp.ne.s32.totalorder %s21_s10, %s136_s13  ;;  %p142_p2 = scmp.lt.s32.totalorder %s136_s13, %s136_s13 }
   0x7   :  { %p143_p3 = por %p142_p2, %p141_p1 }
   0x9   :  { %p144_p4 = pnand %p143_p3, %p137_p0 }
   0xb   :  { %147 = shalt.err (!%p144_p4)
}
   0xc   :  { %23 = dma.hbm_to_vmem [thread:$0]  %s209_s0, 256, %s21_s10, [#allocation4]  }
   0xd   :  { %s156_s16 = scalar_lea.vmem %s35_s12, 256  ;;  %p161_p6 = scmp.lt.s32.totalorder %s35_s12, %s35_s12 }
   0xe   :  { %p157_p5 = scmp.ne.s32.totalorder %s35_s12, %s156_s16  ;;  %p162_p7 = scmp.lt.s32.totalorder %s156_s16, %s156_s16 }
  0x10   :  { %p163_p8 = por %p162_p7, %p161_p6 }
  0x12   :  { %p164_p9 = pnand %p163_p8, %p157_p5 }
  0x14   :  { %167 = shalt.err (!%p164_p9)
}
  0x15   :  { %37 = dma.hbm_to_vmem [thread:$0]  %s210_s1, 256, %s35_s12, [#allocation7]  }
  0x16   :  { %176 = dma.done.wait [#allocation4], 256  }
  0x17   :  { %177 = vsyncadd [#allocation4], 4294967040 }
  0x18   :  { %178 = dma.done.wait [#allocation7], 256  }
  0x19   :  { %179 = vsyncadd [#allocation7], 4294967040  ;;  %v52_v0 = vld [vmem:[#allocation3] sm:$0xff]  ;;  %v53_v1 = vld [vmem:[#allocation3 + $0x8] sm:$0xff]  ;;  %vm85_vm0 = vcmask 1043456   ;;  %s184_s1 = smov [#allocation8]  }
  0x1a   :  { %v60_v2 = vsub.f32 1.0, %v52_v0  ;;  %v61_v3 = vsub.f32 1.0, %v53_v1  ;;  %v54_v6 = vld [vmem:[#allocation6] sm:$0xff]  ;;  %v55_v7 = vld [vmem:[#allocation6 + $0x8] sm:$0xff] }
  0x1b   :  { %v56_v8 = vsub.f32 %v52_v0, %v54_v6  ;;  %v57_v9 = vsub.f32 %v53_v1, %v55_v7 }
  0x1c   :  { %v62_v4 = vmul.f32 %v60_v2, %v52_v0  ;;  %v63_v5 = vmul.f32 %v61_v3, %v53_v1 }
  0x1d   :  { %v58_v10 = vmul.f32 %v56_v8, %v56_v8  ;;  %v59_v11 = vmul.f32 %v57_v9, %v57_v9 }
  0x1e   :  { %124 = vrcp.f32 %v62_v4 }
  0x1f   :  { %126 = vrcp.f32 %v63_v5 }
  0x2b   :  { %v125_v12 = vpop.eup %124 }
  0x2c   :  { %v127_v13 = vpop.eup %126  ;;  %v65_v14 = vmul.f32 %v125_v12, %v58_v10 }
  0x2d   :  { %v67_v15 = vmul.f32 %v127_v13, %v59_v11 }
  0x2e   :  { %v81_v16 = vcombine.high %v65_v14, %v65_v14  ;;  %v86_v17 = vsel %vm85_vm0, %v65_v14, 0.0 }
  0x2f   :  { %v82_v18 = vcombine.high %v67_v15, %v67_v15  ;;  %v89_v20 = vsel %vm85_vm0, %v67_v15, 0.0 }
  0x30   :  { %v87_v19 = vsel %vm85_vm0, %v81_v16, 0.0 }
  0x31   :  { %v88_v21 = vadd.f32 %v87_v19, %v86_v17  ;;  %v91_v22 = vsel %vm85_vm0, %v82_v18, 0.0 }
  0x33   :  { %v90_v23 = vadd.f32 %v89_v20, %v88_v21 }
  0x35   :  { %v92_v24 = vadd.f32 %v91_v22, %v90_v23 }
  0x37   :  { %93 = vadd.xlane.f32.xlu0 %v92_v24 }
  0xc0   :  { %v94_v25 = vpop.xlane.xlu0 %93 }
  0xc1   :  { %v95_v26 = vrot.slane %v94_v25, 4 }
  0xc3   :  { %v96_v27 = vadd.f32 %v95_v26, %v94_v25 }
  0xc5   :  { %v97_v28 = vrot.slane %v96_v27, 2 }
  0xc7   :  { %v98_v29 = vadd.f32 %v97_v28, %v96_v27 }
  0xc9   :  { %v99_v30 = vrot.slane %v98_v29, 1 }
  0xcb   :  { %v100_v31 = vadd.f32 %v99_v30, %v98_v29 }
  0xcd   :  { %119 = vpush %v100_v31 }
  0xfe   :  { %s120_s0 = spop %119 }
  0xff   :  { %103 = sst [smem:[#allocation8]] %s120_s0 }
 0x100   :  { %111 = dma.smem_to_hbm %s184_s1, 16, %s211_s2, [#allocation5]  }
 0x101   :  { %180 = dma.done.wait [#allocation5], 16  }
 0x102   :  { %181 = vsyncadd [#allocation5], 4294967280 }
 0x103   :  { %115 = sfence }
 0x104   :  { %116 = vsyncpa [#allocation4], 1 }
 0x105   :  { %117 = vsyncpa [#allocation7], 1 }
 0x106   :  { %118 = vsyncpa [#allocation5], 1 }

</bundles_post_ra>
